<compile_context>
chip_gen: v5e
topology: v5e:2x2
jax: 0.10.0
libtpu: 0.0.40
codegen_flags: <defaults>
</compile_context>

<pallas_src>
import math

import jax
import jax.numpy as jnp
from jax.experimental import pallas as pl
from jax.experimental.pallas import tpu as pltpu


def build_pos_enc(emb_size: int, max_seq_length: int) -> jnp.ndarray:
    """Sinusoidal table identical to the PyTorch __init__; shape (1, L, E)."""
    # NOTE: like the PyTorch original, this assumes an even emb_size.
    position = jnp.arange(0, max_seq_length, dtype=jnp.float32)[:, None]        # (L, 1)
    div_term = jnp.exp(
        jnp.arange(0, emb_size, 2, dtype=jnp.float32) * (-math.log(10000.0) / emb_size)
    )                                                                            # (E/2,)
    angles = position * div_term                                                 # (L, E/2)
    pos_enc = jnp.zeros((max_seq_length, emb_size), dtype=jnp.float32)
    pos_enc = pos_enc.at[:, 0::2].set(jnp.sin(angles))
    pos_enc = pos_enc.at[:, 1::2].set(jnp.cos(angles))
    return pos_enc[None, :, :]                                                   # (1, L, E)


def _add_pe_kernel(x_ref, pe_ref, o_ref):
    # x_ref / o_ref: (1, T, lanes) tile of one batch row; pe_ref: matching tile.
    o_ref[...] = (x_ref[...] + pe_ref[...]).astype(o_ref.dtype)


_LANES = 128
_TARGET_TILE_ROWS = 2048  # 2048 rows x 128 lanes x 4 B = 1 MiB per buffer (multiple of 8)


def positional_encoding_forward(x: jnp.ndarray, pos_enc: jnp.ndarray) -> jnp.ndarray:
    """x: (B, S, E); pos_enc: (1, max_len, E). Returns x + pos_enc[:, :S]."""
    B, S, E = x.shape
    one, max_len, E2 = pos_enc.shape
    assert one == 1 and E2 == E and S <= max_len

    # Keep the in-kernel add in x's dtype (no surprise promotion / extra casts).
    pos_enc = pos_enc.astype(x.dtype)

    flat = S * E
    if flat % _LANES == 0 and (max_len * E) % _LANES == 0:
        # ---- lane-dense fast path -------------------------------------------
        rows = flat // _LANES
        pe_rows_total = (max_len * E) // _LANES
        x_flat = x.reshape(B, rows, _LANES)

        tr = rows if rows <= _TARGET_TILE_ROWS else _TARGET_TILE_ROWS
        if tr % 8 == 0:
            # Pass the whole table; the index_map walks only its first `rows` rows.
            pe_in = pos_enc.reshape(1, pe_rows_total, _LANES)
        else:
            # Small / ragged case: the tile must equal pe's full sublane extent,
            # so take the tiny (1, rows, 128) prefix (a few KiB at most).
            pe_in = pos_enc.reshape(1, pe_rows_total, _LANES)[:, :rows, :]

        grid = (pl.cdiv(rows, tr), B)  # batch innermost -> pe block re-DMA skipped
        out_flat = pl.pallas_call(
            _add_pe_kernel,
            out_shape=jax.ShapeDtypeStruct((B, rows, _LANES), x.dtype),
            grid=grid,
            in_specs=[
                pl.BlockSpec((1, tr, _LANES), lambda r, b: (b, r, 0)),  # x tile
                pl.BlockSpec((1, tr, _LANES), lambda r, b: (0, r, 0)),  # pe (batch-invariant)
            ],
            out_specs=pl.BlockSpec((1, tr, _LANES), lambda r, b: (b, r, 0)),
            input_output_aliases={0: 0},  # write the result over x's HBM buffer
            compiler_params=pltpu.CompilerParams(
                dimension_semantics=("parallel", "parallel"),
                vmem_limit_bytes=32 * 1024 * 1024,
            ),
        )(x_flat, pe_in)
        return out_flat.reshape(B, S, E)

    # ---- fallback: S*E not 128-divisible -> full-extent (S, E) blocks ---------
    pe = pos_enc[:, :S, :]
    return pl.pallas_call(
        _add_pe_kernel,
        out_shape=jax.ShapeDtypeStruct((B, S, E), x.dtype),
        grid=(B,),
        in_specs=[
            pl.BlockSpec((1, S, E), lambda b: (b, 0, 0)),
            pl.BlockSpec((1, S, E), lambda b: (0, 0, 0)),
        ],
        out_specs=pl.BlockSpec((1, S, E), lambda b: (b, 0, 0)),
        input_output_aliases={0: 0},
        compiler_params=pltpu.CompilerParams(
            dimension_semantics=("parallel",),
            vmem_limit_bytes=32 * 1024 * 1024,
        ),
    )(x, pe)


if __name__ == "__main__":
    # Module config
    emb_size = 32
    max_seq_length = 16

    # Input: (batch=2, seq=8, emb=32)
    B, S, E = 2, 8, emb_size
    key = jax.random.PRNGKey(0)
    x = jax.random.normal(key, (B, S, E), dtype=jnp.float32)

    pos_enc = build_pos_enc(emb_size, max_seq_length)

    # Pure-JAX reference (computed before the kernel call).
    ref = x + pos_enc[:, :S, :]

    fwd = jax.jit(positional_encoding_forward)
    out = fwd(x, pos_enc)
    out = jax.block_until_ready(out)

    assert out.shape == (B, S, E)
    assert jnp.allclose(out, ref, atol=1e-6), "mismatch vs reference"

    print("KERNEL_OK")
</pallas_src>

<mosaic_0001>
module attributes {stable_mosaic.version = 11 : i64} {
  func.func @_add_pe_kernel(%arg0: i32, %arg1: i32, %arg2: memref<1x2x128xf32, #tpu.memory_space<vmem>>, %arg3: memref<1x2x128xf32, #tpu.memory_space<vmem>>, %arg4: memref<1x2x128xf32, #tpu.memory_space<vmem>>) attributes {dimension_semantics = [#tpu.dimension_semantics<parallel>, #tpu.dimension_semantics<parallel>], iteration_bounds = array<i64: 1, 2>, scalar_prefetch = 0 : i64, scratch_operands = 0 : i64, tpu.core_type = #tpu.core_type<tc>, window_params = [{transform_indices = @transform_0, window_bounds = array<i64: 1, 2, 128>}, {transform_indices = @transform_1, window_bounds = array<i64: 1, 2, 128>}, {transform_indices = @transform_2, window_bounds = array<i64: 1, 2, 128>}]} {
    %c0 = arith.constant 0 : index
    %c0_0 = arith.constant 0 : index
    %c0_1 = arith.constant 0 : index
    %0 = vector.load %arg2[%c0, %c0_0, %c0_1] : memref<1x2x128xf32, #tpu.memory_space<vmem>>, vector<1x2x128xf32>
    %c0_2 = arith.constant 0 : index
    %c0_3 = arith.constant 0 : index
    %c0_4 = arith.constant 0 : index
    %1 = vector.load %arg3[%c0_2, %c0_3, %c0_4] : memref<1x2x128xf32, #tpu.memory_space<vmem>>, vector<1x2x128xf32>
    %2 = arith.addf %0, %1 : vector<1x2x128xf32>
    %c0_5 = arith.constant 0 : index
    %c0_6 = arith.constant 0 : index
    %c0_7 = arith.constant 0 : index
    %3 = vector.load %arg4[%c0_5, %c0_6, %c0_7] : memref<1x2x128xf32, #tpu.memory_space<vmem>>, vector<1x2x128xf32>
    tpu.vector_store %arg4[%c0_5, %c0_6, %c0_7], %2 {strides = array<i32>} : memref<1x2x128xf32, #tpu.memory_space<vmem>>, vector<1x2x128xf32>,
    return
  }
  func.func @transform_0(%arg0: i32, %arg1: i32) -> (i32, i32, i32) {
    %c0_i32 = arith.constant 0 : i32
    %c0_i32_0 = arith.constant 0 : i32
    return %arg1, %arg0, %c0_i32 : i32, i32, i32
  }
  func.func @transform_1(%arg0: i32, %arg1: i32) -> (i32, i32, i32) {
    %c0_i32 = arith.constant 0 : i32
    %c0_i32_0 = arith.constant 0 : i32
    %c0_i32_1 = arith.constant 0 : i32
    return %c0_i32, %arg0, %c0_i32_0 : i32, i32, i32
  }
  func.func @transform_2(%arg0: i32, %arg1: i32) -> (i32, i32, i32) {
    %c0_i32 = arith.constant 0 : i32
    %c0_i32_0 = arith.constant 0 : i32
    return %arg1, %arg0, %c0_i32 : i32, i32, i32
  }
}

</mosaic_0001>

<bundles_post_ra>
// kernel: positional_encoding_forward.1
= control target key start
LH: loop header
LB: loop body
LE: loop exit
PB: predicated region body
PF: predicated region fallthrough
CT: control target
= control target key end

     0   :  { %s354_s9 = smov 0   ;;  %s331_s10 = smov 0   ;;  %s368_s0 = inlined_call_operand.vmem [shape: f32[2,2,128], index: 0, kind: input, shape index: {}, may-alias: {0,2}]   ;;  %s369_s1 = inlined_call_operand.vmem [shape: f32[1,2,128], index: 1, kind: input, shape index: {}]   ;;  %s370_s2 = inlined_call_operand.vmem [shape: f32[2,2,128], index: 2, kind: output, shape index: {}, may-alias: {0,2}]  }
   0x1   :  { %s335_s11 = smov 0  }
   0x2 LB: > { %s21_s12 = sadd.s32 1, %s333_s10  ;;  %p286_p0 = scmp.ge.s32.totalorder %s337_s11, 1  ;;  %s337_s11 = sphi %s335_s11, %s12_s11   ;;  %s333_s10 = sphi %s331_s10, %s332_s10   ;;  %s329_s9 = sphi %s354_s9, %s371_s9  }
   0x3   : > { %p22_p1 = scmp.ge.s32.totalorder %s21_s12, 2  ;;  %p139_p2 = scmp.lt.s32.totalorder %s337_s11, 3 }
   0x5   : > { %s373_s12 = smov (%p22_p1, %s21_s12), 0  ;;  %p140_p3 = pnand %p286_p0, %p139_p2 }
   0x6   : > { %p169_p4 = scmp.lt.s32.totalorder (!%p140_p3), %s329_s9, 1 }
   0x7   : > { %143 = sbr.rel (%p140_p3) target bundleno = 19 (0x13), region = 28 }
   0xc   : > { %s375_s9 = smov (!%p169_p4, %s329_s9), 1  ;;  %v188_v0 = vld [vmem:[%s369_s1] sm:$0x3] }
   0xd   : > { %s287_s13 = sshll.u32 %s375_s9, 1 }
   0xe   : > { %s175_s18 = scalar_lea.vmem %s368_s0, %s287_s13  ;;  %s186_s21 = scalar_lea.vmem %s370_s2, %s287_s13 }
   0xf   : > { %v187_v1 = vld [vmem:[%s175_s18] sm:$0x3] }
  0x10   : > { %v189_v2 = vadd.f32 %v188_v0, %v187_v1 }
  0x12   : > { %190 = vst [vmem:[%s186_s21] sm:$0x3] %v189_v2 }
  0x13 PF: > { %s12_s11 = sadd.s32 1, %s337_s11   ;;  %s371_s9 = smov %s333_s10 }
  0x14   : > { %p9_p5 = scmp.ge.s32.totalorder %s12_s11, 4   ;;  %s332_s10 = smov %s373_s12  }
  0x16   :  { %11 = sbr.rel (!%p9_p5) target bundleno = 2 (0x2), region = 61 }

</bundles_post_ra>
